<compile_context>
chip_gen: v5e
topology: v5e:2x2
jax: 0.10.0
libtpu: 0.0.40
codegen_flags: <defaults>
</compile_context>

<pallas_src>
import jax
import jax.numpy as jnp
from jax import lax
from jax.experimental import pallas as pl
from jax.experimental.pallas import tpu as pltpu


def _mix32(z):
    """splitmix32-style avalanche mixer on uint32 words (VPU int ops only)."""
    z = (z ^ (z >> 16)) * jnp.uint32(0x85EBCA6B)
    z = (z ^ (z >> 13)) * jnp.uint32(0xC2B2AE35)
    return z ^ (z >> 16)


def _test_model_kernel(seed_ref, x_ref, o_ref):
    i = pl.program_id(0)
    x = x_ref[...]
    tm, ln = x.shape  # static block shape

    # ---- counter-based PRNG: one 32-bit random word per element -----------
    row = lax.broadcasted_iota(jnp.int32, x.shape, 0)
    col = lax.broadcasted_iota(jnp.int32, x.shape, 1)
    seed = seed_ref[0]
    # Globally unique element index (independent of tiling) mixed with the
    # seed.  -1640531527 == 0x9E3779B9 (golden ratio) as signed int32; int32
    # mul/add wrap mod 2^32, matching unsigned arithmetic bit-for-bit.
    ctr = (i * tm + row) * ln + col + seed * jnp.int32(-1640531527)
    bits = _mix32(lax.bitcast_convert_type(ctr, jnp.uint32))

    # Two draws from the single random word:
    #   top 23 bits -> uniform float32 in [0, 1)
    #   low  9 bits -> integer uniform over {3, ..., 9}
    hi = lax.bitcast_convert_type(bits >> 9, jnp.int32).astype(jnp.float32)
    u1 = hi * jnp.float32(1.0 / (1 << 23))
    lo = lax.bitcast_convert_type(bits & jnp.uint32(0x1FF), jnp.int32)
    rand_int = jnp.floor(lo.astype(jnp.float32) * jnp.float32(7.0 / 512.0)) + 3.0

    # ---- TestModel forward semantics ---------------------------------------
    add = x + 10.0                   # input + 10
    r = u1 * add                     # torch.rand_like(add) * add
    relu = jnp.maximum(r, 0.0)       # torch.relu(rand)
    o_ref[...] = (rand_int + relu).astype(o_ref.dtype)  # randint[3,10) + relu


def test_model_forward(x, seed=0, *, tile_rows=512, lanes=1024):
    """Forward pass of TestModel(op=rand, is_checkpoint=*) on TPU via Pallas.

    Accepts any shape / element count (pads to a lane-dense slab internally).
    """
    orig_shape = x.shape
    if x.dtype != jnp.float32:
        # TODO(synk): for bf16 inputs the cast could be folded into the kernel
        # to hide it behind the same DMA; the reference test uses f32 inputs.
        x = x.astype(jnp.float32)

    total = x.size
    flat = x.reshape(-1)
    padded = pl.cdiv(total, lanes) * lanes
    if padded != total:
        flat = jnp.pad(flat, (0, padded - total))
    rows = padded // lanes
    x2d = flat.reshape(rows, lanes)

    # Block sublane dim: 512 (multiple of 8) for large inputs, or the full row
    # count (== array dim, always legal) for small ones.  2 MiB f32 tiles keep
    # in+out double buffers ~8 MiB: safe on v5e/v6e/v7x scoped-VMEM defaults.
    bm = min(tile_rows, rows)
    grid = (pl.cdiv(rows, bm),)

    seed_arr = jnp.asarray([seed], dtype=jnp.int32)

    out2d = pl.pallas_call(
        _test_model_kernel,
        out_shape=jax.ShapeDtypeStruct((rows, lanes), jnp.float32),
        grid=grid,
        in_specs=[
            pl.BlockSpec(memory_space=pltpu.MemorySpace.SMEM),  # seed scalar
            pl.BlockSpec((bm, lanes), lambda i: (i, 0)),
        ],
        out_specs=pl.BlockSpec((bm, lanes), lambda i: (i, 0)),
        compiler_params=pltpu.CompilerParams(
            dimension_semantics=("parallel",),
        ),
    )(seed_arr, x2d)

    return out2d.reshape(-1)[:total].reshape(orig_shape)


if __name__ == "__main__":
    key = jax.random.PRNGKey(0)
    # Small NCHW input consistent with the elementwise forward.
    x = jax.random.normal(key, (2, 4, 16, 16), dtype=jnp.float32)

    y = test_model_forward(x, seed=0)
    y = jax.block_until_ready(y)

    # out = randint[3,10) + relu(rand*(x+10))  =>  out >= 3 everywhere, finite,
    # and out <= 9 + relu upper bound.
    assert y.shape == x.shape and y.dtype == jnp.float32
    assert bool(jnp.all(y >= 3.0))
    assert bool(jnp.all(jnp.isfinite(y)))
    assert bool(jnp.all(y <= 9.0 + jnp.maximum(x + 10.0, 0.0)))
    print("KERNEL_OK")
</pallas_src>

<mosaic_0001>
module attributes {stable_mosaic.version = 11 : i64} {
  func.func @_test_model_kernel(%arg0: i32, %arg1: memref<1xi32, #tpu.memory_space<smem>>, %arg2: memref<2x1024xf32, #tpu.memory_space<vmem>>, %arg3: memref<2x1024xf32, #tpu.memory_space<vmem>>) attributes {dimension_semantics = [#tpu.dimension_semantics<parallel>], iteration_bounds = array<i64: 1>, scalar_prefetch = 0 : i64, scratch_operands = 0 : i64, tpu.core_type = #tpu.core_type<tc>, window_params = [{transform_indices = @transform_0, window_bounds = array<i64: 1>}, {transform_indices = @transform_1, window_bounds = array<i64: 2, 1024>}, {transform_indices = @transform_2, window_bounds = array<i64: 2, 1024>}]} {
    %c0 = arith.constant 0 : index
    %c0_0 = arith.constant 0 : index
    %0 = vector.load %arg2[%c0, %c0_0] : memref<2x1024xf32, #tpu.memory_space<vmem>>, vector<2x1024xf32>
    %1 = tpu.iota {dimensions = array<i32: 0>} : vector<2x1024xi32>
    %2 = tpu.iota {dimensions = array<i32: 1>} : vector<2x1024xi32>
    %c0_1 = arith.constant 0 : index
    %3 = memref.load %arg1[%c0_1] : memref<1xi32, #tpu.memory_space<smem>>
    %c2_i32 = arith.constant 2 : i32
    %4 = arith.muli %arg0, %c2_i32 : i32
    %5 = vector.broadcast %4 : i32 to vector<2x1024xi32>
    %6 = arith.addi %5, %1 : vector<2x1024xi32>
    %c1024_i32 = arith.constant 1024 : i32
    %7 = vector.broadcast %c1024_i32 : i32 to vector<2x1024xi32>
    %8 = arith.muli %6, %7 : vector<2x1024xi32>
    %9 = arith.addi %8, %2 : vector<2x1024xi32>
    %c-1640531527_i32 = arith.constant -1640531527 : i32
    %10 = arith.muli %3, %c-1640531527_i32 : i32
    %11 = vector.broadcast %10 : i32 to vector<2x1024xi32>
    %12 = arith.addi %9, %11 : vector<2x1024xi32>
    %13 = tpu.bitcast %12 : vector<2x1024xi32> -> vector<2x1024xi32>
    %c16_i32 = arith.constant 16 : i32
    %14 = vector.broadcast %c16_i32 : i32 to vector<2x1024xi32>
    %15 = arith.shrui %13, %14 : vector<2x1024xi32>
    %16 = arith.xori %13, %15 : vector<2x1024xi32>
    %c-2048144789_i32 = arith.constant -2048144789 : i32
    %17 = vector.broadcast %c-2048144789_i32 : i32 to vector<2x1024xi32>
    %18 = arith.muli %16, %17 : vector<2x1024xi32>
    %c13_i32 = arith.constant 13 : i32
    %19 = vector.broadcast %c13_i32 : i32 to vector<2x1024xi32>
    %20 = arith.shrui %18, %19 : vector<2x1024xi32>
    %21 = arith.xori %18, %20 : vector<2x1024xi32>
    %c-1028477387_i32 = arith.constant -1028477387 : i32
    %22 = vector.broadcast %c-1028477387_i32 : i32 to vector<2x1024xi32>
    %23 = arith.muli %21, %22 : vector<2x1024xi32>
    %c16_i32_2 = arith.constant 16 : i32
    %24 = vector.broadcast %c16_i32_2 : i32 to vector<2x1024xi32>
    %25 = arith.shrui %23, %24 : vector<2x1024xi32>
    %26 = arith.xori %23, %25 : vector<2x1024xi32>
    %c9_i32 = arith.constant 9 : i32
    %27 = vector.broadcast %c9_i32 : i32 to vector<2x1024xi32>
    %28 = arith.shrui %26, %27 : vector<2x1024xi32>
    %29 = tpu.bitcast %28 : vector<2x1024xi32> -> vector<2x1024xi32>
    %30 = arith.sitofp %29 : vector<2x1024xi32> to vector<2x1024xf32>
    %cst = arith.constant 1.1920929E-7 : f32
    %31 = vector.broadcast %cst : f32 to vector<2x1024xf32>
    %32 = arith.mulf %30, %31 : vector<2x1024xf32>
    %c511_i32 = arith.constant 511 : i32
    %33 = vector.broadcast %c511_i32 : i32 to vector<2x1024xi32>
    %34 = arith.andi %26, %33 : vector<2x1024xi32>
    %35 = tpu.bitcast %34 : vector<2x1024xi32> -> vector<2x1024xi32>
    %36 = arith.sitofp %35 : vector<2x1024xi32> to vector<2x1024xf32>
    %cst_3 = arith.constant 0.013671875 : f32
    %37 = vector.broadcast %cst_3 : f32 to vector<2x1024xf32>
    %38 = arith.mulf %36, %37 : vector<2x1024xf32>
    %39 = math.floor %38 : vector<2x1024xf32>
    %cst_4 = arith.constant 3.000000e+00 : f32
    %40 = vector.broadcast %cst_4 : f32 to vector<2x1024xf32>
    %41 = arith.addf %39, %40 : vector<2x1024xf32>
    %cst_5 = arith.constant 1.000000e+01 : f32
    %42 = vector.broadcast %cst_5 : f32 to vector<2x1024xf32>
    %43 = arith.addf %0, %42 : vector<2x1024xf32>
    %44 = arith.mulf %32, %43 : vector<2x1024xf32>
    %cst_6 = arith.constant 0.000000e+00 : f32
    %45 = vector.broadcast %cst_6 : f32 to vector<2x1024xf32>
    %46 = arith.maximumf %44, %45 : vector<2x1024xf32>
    %47 = arith.addf %41, %46 : vector<2x1024xf32>
    %c0_7 = arith.constant 0 : index
    %c0_8 = arith.constant 0 : index
    %48 = vector.load %arg3[%c0_7, %c0_8] : memref<2x1024xf32, #tpu.memory_space<vmem>>, vector<2x1024xf32>
    tpu.vector_store %arg3[%c0_7, %c0_8], %47 {strides = array<i32>} : memref<2x1024xf32, #tpu.memory_space<vmem>>, vector<2x1024xf32>,
    return
  }
  func.func @transform_0(%arg0: i32) -> i32 {
    %c0_i32 = arith.constant 0 : i32
    %c0_i32_0 = arith.constant 0 : i32
    return %c0_i32 : i32
  }
  func.func @transform_1(%arg0: i32) -> (i32, i32) {
    %c0_i32 = arith.constant 0 : i32
    %c0_i32_0 = arith.constant 0 : i32
    return %arg0, %c0_i32 : i32, i32
  }
  func.func @transform_2(%arg0: i32) -> (i32, i32) {
    %c0_i32 = arith.constant 0 : i32
    %c0_i32_0 = arith.constant 0 : i32
    return %arg0, %c0_i32 : i32, i32
  }
}

</mosaic_0001>

<bundles_post_ra>
// kernel: tpu_custom_call.1
= control target key start
LH: loop header
LB: loop body
LE: loop exit
PB: predicated region body
PF: predicated region fallthrough
CT: control target
= control target key end

     0   :  { %8 = vsyncpa [#allocation4], 0  ;;  %s380_s0 = inlined_call_operand.<no memory space> [shape: s32[1], index: 0, kind: input, shape index: {}]   ;;  %s381_s1 = inlined_call_operand.hbm [shape: f32[2,1024], index: 1, kind: input, shape index: {}]   ;;  %s382_s2 = inlined_call_operand.hbm [shape: f32[2,1024], index: 2, kind: output, shape index: {}]  }
   0x1   :  { %9 = vsyncpa [#allocation5], 0  ;;  %s17_s11 = sshll.u32 %s381_s1, 4  ;;  %s336_s12 = smov [#allocation3]   ;;  %s18_s11 = int_to_ptr.hbm [resolvable:$true] %s17_s11 }
   0x2   :  { %s19_s13 = sshll.u32 %s336_s12, 4  ;;  %s20_s13 = int_to_ptr.vmem [resolvable:$true] %s19_s13 }
   0x3   :  { %22 = dma.hbm_to_vmem [thread:$0]  %s18_s11, 256, %s20_s13, [#allocation4]  }
   0x4   :  { %332 = dma.done.wait [#allocation4], 256  }
   0x5   :  { %333 = vsyncadd [#allocation4], 4294967040  ;;  %v29_v0 = vlaneseq  ;;  %s53_s16 = smul.u32 2654435769, %s380_s0  ;;  %v27_v16 = vld [vmem:[#allocation3] sm:$0xff]  ;;  %v28_v17 = vld [vmem:[#allocation3 + $0x8] sm:$0xff] }
   0x6   :  { %v191_v21 = vadd.f32 10.0, %v27_v16  ;;  %v192_v22 = vadd.f32 10.0, %v28_v17  ;;  %vm252_vm0 = vcmask 1041408   ;;  %vm254_vm1 = vcmask 1045508   ;;  %s337_s0 = smov [#allocation6]   ;;  %s272_s19 = sshll.u32 %s382_s2, 4  ;;  %s273_s19 = int_to_ptr.hbm [resolvable:$true] %s272_s19 }
   0x7   :  { %v30_v1 = vshrl.u32 %v29_v0, 7  ;;  %v32_v2 = vand.u32 127, %v29_v0  ;;  %v54_v3 = vstv %s53_s16  ;;  %vm256_vm2 = vcmask 1043456   ;;  %s270_s1 = sshll.u32 %s337_s0, 4  ;;  %s271_s1 = int_to_ptr.vmem [resolvable:$true] %s270_s1 }
   0x8   :  { %195 = vst [vmem:[#allocation1] ss:$4 sm:$0xff] %v191_v21 }
   0x9   :  { %v33_v4 = vadd.s32 128, %v32_v2  ;;  %v34_v5 = vadd.s32 256, %v32_v2  ;;  %v35_v6 = vadd.s32 384, %v32_v2  ;;  %v44_v7 = vmul.u32 1024, %v30_v1  ;;  %197 = vst [vmem:[#allocation1 + $0x20] ss:$4 sm:$0xff] %v192_v22 }
   0xa   :  { %v36_v8 = vadd.s32 512, %v32_v2  ;;  %v37_v9 = vadd.s32 640, %v32_v2  ;;  %v38_v10 = vadd.s32 768, %v32_v2  ;;  %v39_v11 = vadd.s32 896, %v32_v2 }
   0xb   :  { %v45_v12 = vadd.s32 %v44_v7, %v32_v2  ;;  %v46_v13 = vadd.s32 %v44_v7, %v33_v4  ;;  %v47_v14 = vadd.s32 %v44_v7, %v34_v5  ;;  %v48_v15 = vadd.s32 %v44_v7, %v35_v6 }
   0xc   :  { %v49_v18 = vadd.s32 %v44_v7, %v36_v8  ;;  %v50_v19 = vadd.s32 %v44_v7, %v37_v9  ;;  %v51_v20 = vadd.s32 %v44_v7, %v38_v10  ;;  %v52_v29 = vadd.s32 %v44_v7, %v39_v11 }
   0xd   :  { %v55_v23 = vadd.s32 %v54_v3, %v45_v12  ;;  %v56_v24 = vadd.s32 %v54_v3, %v46_v13  ;;  %v57_v25 = vadd.s32 %v54_v3, %v47_v14  ;;  %v58_v26 = vadd.s32 %v54_v3, %v48_v15 }
   0xe   :  { %v59_v30 = vadd.s32 %v54_v3, %v49_v18  ;;  %v60_v33 = vadd.s32 %v54_v3, %v50_v19  ;;  %v61_v34 = vadd.s32 %v54_v3, %v51_v20  ;;  %v62_v37 = vadd.s32 %v54_v3, %v52_v29 }
   0xf   :  { %v63_v27 = vshrl.u32 %v55_v23, 16  ;;  %v64_v28 = vshrl.u32 %v56_v24, 16  ;;  %v65_v31 = vshrl.u32 %v57_v25, 16  ;;  %v66_v32 = vshrl.u32 %v58_v26, 16 }
  0x10   :  { %v67_v38 = vshrl.u32 %v59_v30, 16  ;;  %v68_v41 = vshrl.u32 %v60_v33, 16  ;;  %v69_v42 = vshrl.u32 %v61_v34, 16  ;;  %v70_v45 = vshrl.u32 %v62_v37, 16 }
  0x11   :  { %v71_v35 = vxor.u32 %v63_v27, %v55_v23  ;;  %v72_v36 = vxor.u32 %v64_v28, %v56_v24  ;;  %v73_v39 = vxor.u32 %v65_v31, %v57_v25  ;;  %v74_v40 = vxor.u32 %v66_v32, %v58_v26 }
  0x12   :  { %v75_v46 = vxor.u32 %v67_v38, %v59_v30  ;;  %v76_v49 = vxor.u32 %v68_v41, %v60_v33  ;;  %v77_v52 = vxor.u32 %v69_v42, %v61_v34  ;;  %v78_v56 = vxor.u32 %v70_v45, %v62_v37  ;;  %v198_v34 = vld.sshfl [vmem:[#allocation1] sm:$0xff pattern:$0x73625140]  ;;  %v201_v41 = vld.sshfl [vmem:[#allocation1 + $0x18] sm:$0xff pattern:$0x73625140] }
  0x13   :  { %v79_v43 = vmul.u32 2246822507, %v71_v35  ;;  %v80_v44 = vmul.u32 2246822507, %v72_v36  ;;  %v81_v47 = vmul.u32 2246822507, %v73_v39 }
  0x14   :  { %v82_v48 = vmul.u32 2246822507, %v74_v40  ;;  %v83_v53 = vmul.u32 2246822507, %v75_v46  ;;  %v84_v61 = vmul.u32 2246822507, %v76_v49 }
  0x15   :  { %v87_v50 = vshrl.u32 %v79_v43, 13  ;;  %v88_v51 = vshrl.u32 %v80_v44, 13  ;;  %v89_v54 = vshrl.u32 %v81_v47, 13  ;;  %v85_v1 = vmul.u32 2246822507, %v77_v52 }
  0x16   :  { %v90_v55 = vshrl.u32 %v82_v48, 13  ;;  %v91_v62 = vshrl.u32 %v83_v53, 13  ;;  %v86_v4 = vmul.u32 2246822507, %v78_v56  ;;  %v92_v8 = vshrl.u32 %v84_v61, 13 }
  0x17   :  { %v95_v57 = vxor.u32 %v87_v50, %v79_v43  ;;  %v96_v58 = vxor.u32 %v88_v51, %v80_v44  ;;  %v97_v59 = vxor.u32 %v89_v54, %v81_v47  ;;  %v93_v9 = vshrl.u32 %v85_v1, 13  ;;  %v199_v35 = vld.sshfl [vmem:[#allocation1 + $0x8] sm:$0xff pattern:$0x73625140] }
  0x18   :  { %v98_v60 = vxor.u32 %v90_v55, %v82_v48  ;;  %v359_v5 = vxor.u32 %v91_v62, %v83_v53  ;;  %v94_v12 = vshrl.u32 %v86_v4, 13  ;;  %v362_v16 = vxor.u32 %v92_v8, %v84_v61  ;;  %v200_v40 = vld.sshfl [vmem:[#allocation1 + $0x10] sm:$0xff pattern:$0x73625140] }
  0x19   :  { %v103_v63 = vmul.u32 3266489909, %v95_v57  ;;  %v104_v0 = vmul.u32 3266489909, %v96_v58  ;;  %v105_v2 = vmul.u32 3266489909, %v97_v59  ;;  %v364_v17 = vxor.u32 %v93_v9, %v85_v1 }
  0x1a   :  { %v106_v3 = vmul.u32 3266489909, %v98_v60  ;;  %v107_v13 = vmul.u32 3266489909, %v359_v5  ;;  %v366_v20 = vxor.u32 %v94_v12, %v86_v4 }
  0x1b   :  { %v111_v6 = vshrl.u32 %v103_v63, 16  ;;  %v112_v7 = vshrl.u32 %v104_v0, 16  ;;  %v113_v10 = vshrl.u32 %v105_v2, 16  ;;  %v109_v4 = vmul.u32 3266489909, %v364_v17 }
  0x1c   :  { %v114_v11 = vshrl.u32 %v106_v3, 16  ;;  %v115_v21 = vshrl.u32 %v107_v13, 16 }
  0x1d   :  { %v119_v14 = vxor.u32 %v111_v6, %v103_v63  ;;  %v120_v15 = vxor.u32 %v112_v7, %v104_v0  ;;  %v121_v18 = vxor.u32 %v113_v10, %v105_v2  ;;  %v110_v7 = vmul.u32 3266489909, %v366_v20 }
  0x1e   :  { %v122_v19 = vxor.u32 %v114_v11, %v106_v3  ;;  %v108_v3 = vmul.u32 3266489909, %v362_v16  ;;  %v123_v8 = vxor.u32 %v115_v21, %v107_v13  ;;  %v117_v12 = vshrl.u32 %v109_v4, 16 }
  0x1f   :  { %v127_v22 = vshrl.u32 %v119_v14, 9  ;;  %v128_v23 = vshrl.u32 %v120_v15, 9  ;;  %v151_v24 = vand.u32 511, %v119_v14  ;;  %v152_v25 = vand.u32 511, %v120_v15 }
  0x20   :  { %v129_v26 = vshrl.u32 %v121_v18, 9  ;;  %v130_v27 = vshrl.u32 %v122_v19, 9  ;;  %v153_v28 = vand.u32 511, %v121_v18  ;;  %v154_v29 = vand.u32 511, %v122_v19 }
  0x21   :  { %v135_v30 = vcvt.s32.f32 %v127_v22  ;;  %v136_v31 = vcvt.s32.f32 %v128_v23  ;;  %v159_v32 = vcvt.s32.f32 %v151_v24  ;;  %v160_v33 = vcvt.s32.f32 %v152_v25 }
  0x22   :  { %v137_v36 = vcvt.s32.f32 %v129_v26  ;;  %v138_v37 = vcvt.s32.f32 %v130_v27  ;;  %v161_v38 = vcvt.s32.f32 %v153_v28  ;;  %v162_v39 = vcvt.s32.f32 %v154_v29  ;;  %v202_v28 = vld.sshfl [vmem:[#allocation1 + $0x20] sm:$0xff pattern:$0x73625140] }
  0x23   :  { %v143_v42 = vmul.f32 1.1920929e-07, %v135_v30  ;;  %v144_v43 = vmul.f32 1.1920929e-07, %v136_v31  ;;  %v167_v44 = vmul.f32 0.013671875, %v159_v32  ;;  %v168_v45 = vmul.f32 0.013671875, %v160_v33 }
  0x24   :  { %v145_v46 = vmul.f32 1.1920929e-07, %v137_v36  ;;  %v146_v47 = vmul.f32 1.1920929e-07, %v138_v37  ;;  %v169_v48 = vmul.f32 0.013671875, %v161_v38  ;;  %v170_v49 = vmul.f32 0.013671875, %v162_v39 }
  0x25   :  { %v175_v50 = vfloor.f32 %v167_v44  ;;  %v176_v51 = vfloor.f32 %v168_v45  ;;  %v214_v52 = vmul.f32 %v198_v34, %v143_v42  ;;  %v215_v53 = vmul.f32 %v199_v35, %v144_v43  ;;  %v203_v37 = vld.sshfl [vmem:[#allocation1 + $0x28] sm:$0xff pattern:$0x73625140]  ;;  %v205_v42 = vld.sshfl [vmem:[#allocation1 + $0x38] sm:$0xff pattern:$0x73625140] }
  0x26   :  { %v177_v54 = vfloor.f32 %v169_v48  ;;  %v178_v55 = vfloor.f32 %v170_v49  ;;  %v216_v56 = vmul.f32 %v200_v40, %v145_v46  ;;  %v217_v57 = vmul.f32 %v201_v41, %v146_v47  ;;  %v204_v41 = vld.sshfl [vmem:[#allocation1 + $0x30] sm:$0xff pattern:$0x73625140] }
  0x27   :  { %v183_v58 = vadd.f32 3.0, %v175_v50  ;;  %v184_v59 = vadd.f32 3.0, %v176_v51  ;;  %v222_v60 = vmax.f32 %v214_v52, 0.0  ;;  %v223_v61 = vmax.f32 %v215_v53, 0.0 }
  0x28   :  { %v185_v62 = vadd.f32 3.0, %v177_v54  ;;  %v186_v63 = vadd.f32 3.0, %v178_v55  ;;  %v224_v0 = vmax.f32 %v216_v56, 0.0  ;;  %v225_v1 = vmax.f32 %v217_v57, 0.0 }
  0x29   :  { %v231_v2 = vadd.f32 %v223_v61, %v184_v59  ;;  %v230_v9 = vadd.f32 %v222_v60, %v183_v58  ;;  %v116_v11 = vshrl.u32 %v108_v3, 16  ;;  %v118_v18 = vshrl.u32 %v110_v7, 16 }
  0x2a   :  { %v232_v5 = vadd.f32 %v224_v0, %v185_v62  ;;  %v233_v6 = vadd.f32 %v225_v1, %v186_v63  ;;  %v131_v19 = vshrl.u32 %v123_v8, 9  ;;  %v125_v24 = vxor.u32 %v117_v12, %v109_v4 }
  0x2b   :  { %v246_v10 = vrot.slane %v231_v2, 6  ;;  %v124_v23 = vxor.u32 %v116_v11, %v108_v3  ;;  %v155_v16 = vand.u32 511, %v123_v8  ;;  %v126_v25 = vxor.u32 %v118_v18, %v110_v7 }
  0x2c   :  { %v247_v14 = vrot.slane %v232_v5, 4  ;;  %v248_v15 = vrot.slane %v233_v6, 2  ;;  %v139_v26 = vcvt.s32.f32 %v131_v19  ;;  %v133_v21 = vshrl.u32 %v125_v24, 9 }
  0x2d   :  { %v253_v22 = vsel %vm252_vm0, %v230_v9, %v246_v10  ;;  %v132_v13 = vshrl.u32 %v124_v23, 9  ;;  %v156_v27 = vand.u32 511, %v124_v23  ;;  %v134_v29 = vshrl.u32 %v126_v25, 9 }
  0x2e   :  { %v255_v17 = vsel %vm254_vm1, %v247_v14, %v248_v15  ;;  %v147_v30 = vmul.f32 1.1920929e-07, %v139_v26  ;;  %v157_v31 = vand.u32 511, %v125_v24  ;;  %v158_v32 = vand.u32 511, %v126_v25 }
  0x2f   :  { %v257_v20 = vsel %vm256_vm2, %v253_v22, %v255_v17  ;;  %v140_v33 = vcvt.s32.f32 %v132_v13  ;;  %v141_v34 = vcvt.s32.f32 %v133_v21  ;;  %v163_v35 = vcvt.s32.f32 %v155_v16 }
  0x30   :  { %263 = vst [vmem:[#allocation6] sm:$0xff] %v257_v20  ;;  %v164_v36 = vcvt.s32.f32 %v156_v27  ;;  %v142_v38 = vcvt.s32.f32 %v134_v29  ;;  %v165_v39 = vcvt.s32.f32 %v157_v31  ;;  %v166_v40 = vcvt.s32.f32 %v158_v32 }
  0x31   :  { %v218_v43 = vmul.f32 %v202_v28, %v147_v30  ;;  %v148_v44 = vmul.f32 1.1920929e-07, %v140_v33  ;;  %v149_v45 = vmul.f32 1.1920929e-07, %v141_v34  ;;  %v171_v46 = vmul.f32 0.013671875, %v163_v35 }
  0x32   :  { %v172_v47 = vmul.f32 0.013671875, %v164_v36  ;;  %v150_v48 = vmul.f32 1.1920929e-07, %v142_v38  ;;  %v173_v49 = vmul.f32 0.013671875, %v165_v39  ;;  %v174_v50 = vmul.f32 0.013671875, %v166_v40 }
  0x33   :  { %v179_v51 = vfloor.f32 %v171_v46  ;;  %v219_v53 = vmul.f32 %v203_v37, %v148_v44  ;;  %v220_v54 = vmul.f32 %v204_v41, %v149_v45  ;;  %v226_v58 = vmax.f32 %v218_v43, 0.0 }
  0x34   :  { %v180_v52 = vfloor.f32 %v172_v47  ;;  %v181_v55 = vfloor.f32 %v173_v49  ;;  %v182_v56 = vfloor.f32 %v174_v50  ;;  %v221_v57 = vmul.f32 %v205_v42, %v150_v48 }
  0x35   :  { %v187_v59 = vadd.f32 3.0, %v179_v51  ;;  %v227_v61 = vmax.f32 %v219_v53, 0.0  ;;  %v228_v62 = vmax.f32 %v220_v54, 0.0 }
  0x36   :  { %v188_v60 = vadd.f32 3.0, %v180_v52  ;;  %v189_v63 = vadd.f32 3.0, %v181_v55  ;;  %v190_v0 = vadd.f32 3.0, %v182_v56  ;;  %v229_v1 = vmax.f32 %v221_v57, 0.0 }
  0x37   :  { %v234_v5 = vadd.f32 %v226_v58, %v187_v59 }
  0x38   :  { %v235_v2 = vadd.f32 %v227_v61, %v188_v60  ;;  %v236_v3 = vadd.f32 %v228_v62, %v189_v63  ;;  %v237_v4 = vadd.f32 %v229_v1, %v190_v0 }
  0x3a   :  { %v249_v6 = vrot.slane %v235_v2, 6  ;;  %v250_v7 = vrot.slane %v236_v3, 4  ;;  %v251_v8 = vrot.slane %v237_v4, 2 }
  0x3c   :  { %v258_v9 = vsel %vm252_vm0, %v234_v5, %v249_v6  ;;  %v259_v10 = vsel %vm254_vm1, %v250_v7, %v251_v8 }
  0x3d   :  { %v260_v11 = vsel %vm256_vm2, %v258_v9, %v259_v10 }
  0x3e   :  { %264 = vst [vmem:[#allocation6 + $0x8] sm:$0xff] %v260_v11 }
  0x3f   :  { %275 = dma.vmem_to_hbm [thread:$0]  %s271_s1, 256, %s273_s19, [#allocation5]  }
  0x40   :  { %334 = dma.done.wait [#allocation5], 256  }
  0x41   :  { %335 = vsyncadd [#allocation5], 4294967040 }
  0x42   :  { %280 = vsyncpa [#allocation4], 1 }
  0x43   :  { %281 = vsyncpa [#allocation5], 1 }

</bundles_post_ra>
